<compile_context>
chip_gen: v6e
topology: v6e:2x2x1
jax: 0.10.0
libtpu: 0.0.40
codegen_flags: <defaults>
</compile_context>

<pallas_src>
import math
import functools
import itertools

import jax
import jax.numpy as jnp
import numpy as np
from jax import lax
from jax.experimental import pallas as pl
from jax.experimental.pallas import tpu as pltpu


_CONTRACT_LAST_LAST = (((1,), (1,)), ((), ()))   # x(m,k) . w(n,k)  -> (m,n)
_CONTRACT_LAST_FIRST = (((1,), (0,)), ((), ()))  # a(m,k) . b(k,n)  -> (m,n)


def _row_tile(n):
    # Biggest row tile <= 512 that satisfies the (8,128)-style constraint:
    # either the full row extent or a multiple of 8/16.
    return n if n <= 512 else 512


# ----------------------------------------------------------------------------
# Fused projection kernels (row-tiled, weights resident in VMEM).
# ----------------------------------------------------------------------------
def _qsig_proj_kernel(x_ref, wq_ref, bq_ref, ws_ref, bs_ref, q_ref, sig_ref):
    x = x_ref[...]                                           # (T, d_model) f32
    # q path: bf16 MXU inputs, f32 accumulate; scale already folded into wq/bq.
    q = lax.dot_general(x.astype(jnp.bfloat16), wq_ref[...],
                        _CONTRACT_LAST_LAST,
                        preferred_element_type=jnp.float32) + bq_ref[...]
    q_ref[...] = q.astype(q_ref.dtype)
    # sigma path kept in f32: downstream 3**sigma / exp(-d / sigma^2) is
    # numerically sensitive and this matmul is tiny (d_model x 2H).
    sig_ref[...] = lax.dot_general(x, ws_ref[...], _CONTRACT_LAST_LAST,
                                   preferred_element_type=jnp.float32) + bs_ref[...]


def _kv_proj_kernel(xk_ref, xv_ref, wk_ref, bk_ref, wv_ref, bv_ref,
                    k_ref, v_ref):
    k = lax.dot_general(xk_ref[...].astype(jnp.bfloat16), wk_ref[...],
                        _CONTRACT_LAST_LAST,
                        preferred_element_type=jnp.float32) + bk_ref[...]
    v = lax.dot_general(xv_ref[...].astype(jnp.bfloat16), wv_ref[...],
                        _CONTRACT_LAST_LAST,
                        preferred_element_type=jnp.float32) + bv_ref[...]
    k_ref[...] = k.astype(k_ref.dtype)
    v_ref[...] = v.astype(v_ref.dtype)


def qsig_projection(x2d, wq_bf16, bq, ws, bs):
    n, d_model = x2d.shape
    d_sig = ws.shape[0]
    t = _row_tile(n)
    return pl.pallas_call(
        _qsig_proj_kernel,
        out_shape=(jax.ShapeDtypeStruct((n, d_model), jnp.bfloat16),
                   jax.ShapeDtypeStruct((n, d_sig), jnp.float32)),
        grid=(pl.cdiv(n, t),),
        in_specs=[
            pl.BlockSpec((t, d_model), lambda i: (i, 0)),
            pl.BlockSpec((d_model, d_model), lambda i: (0, 0)),
            pl.BlockSpec((1, d_model), lambda i: (0, 0)),
            pl.BlockSpec((d_sig, d_model), lambda i: (0, 0)),
            pl.BlockSpec((1, d_sig), lambda i: (0, 0)),
        ],
        out_specs=(
            pl.BlockSpec((t, d_model), lambda i: (i, 0)),
            pl.BlockSpec((t, d_sig), lambda i: (i, 0)),
        ),
        compiler_params=pltpu.CompilerParams(dimension_semantics=("parallel",)),
    )(x2d, wq_bf16, bq, ws, bs)


def kv_projection(k2d, v2d, wk_bf16, bk, wv_bf16, bv):
    n, d_model = k2d.shape
    t = _row_tile(n)
    return pl.pallas_call(
        _kv_proj_kernel,
        out_shape=(jax.ShapeDtypeStruct((n, d_model), jnp.bfloat16),
                   jax.ShapeDtypeStruct((n, d_model), jnp.bfloat16)),
        grid=(pl.cdiv(n, t),),
        in_specs=[
            pl.BlockSpec((t, d_model), lambda i: (i, 0)),
            pl.BlockSpec((t, d_model), lambda i: (i, 0)),
            pl.BlockSpec((d_model, d_model), lambda i: (0, 0)),
            pl.BlockSpec((1, d_model), lambda i: (0, 0)),
            pl.BlockSpec((d_model, d_model), lambda i: (0, 0)),
            pl.BlockSpec((1, d_model), lambda i: (0, 0)),
        ],
        out_specs=(
            pl.BlockSpec((t, d_model), lambda i: (i, 0)),
            pl.BlockSpec((t, d_model), lambda i: (i, 0)),
        ),
        compiler_params=pltpu.CompilerParams(dimension_semantics=("parallel",)),
    )(k2d, v2d, wk_bf16, bk, wv_bf16, bv)


# ----------------------------------------------------------------------------
# Attention + Gaussian-prior ("target") kernel: one batch (all heads) per step.
# ----------------------------------------------------------------------------
def _attn_kernel(q_ref, k_ref, v_ref, sig_ref, out_ref, attn_ref, tgt_ref,
                 *, num_heads, d_head, width):
    q = q_ref[0]          # (L, d_model) bf16, scale_factor already folded in
    k = k_ref[0]          # (S, d_model) bf16
    v = v_ref[0]          # (S, d_model) bf16
    L = q.shape[0]
    S = k.shape[0]

    # Squared 2-D grid distances generated on the fly from iota (no HBM reads /
    # VMEM residency for the (L, S) distance maps).  Float math is exact for
    # these small integers.
    ii = lax.broadcasted_iota(jnp.int32, (L, 1), 0).astype(jnp.float32)
    jj = lax.broadcasted_iota(jnp.int32, (1, S), 1).astype(jnp.float32)
    yi = jnp.floor(ii / width)
    xi = ii - yi * width
    yj = jnp.floor(jj / width)
    xj = jj - yj * width
    ddy = yi - yj
    ddx = xi - xj
    dy = ddy * ddy        # (L, S)
    dx = ddx * ddx        # (L, S)

    # sigma -> Gaussian prior parameters for all heads at once: (L, 2H) f32
    sig = sig_ref[0]
    sig = jax.nn.sigmoid(sig * 5.0) + 1e-05
    sig = jnp.exp(sig * math.log(3.0)) - 1.0            # == 3 ** sig - 1
    inv_2pi = 1.0 / (2.0 * math.pi)

    for h in range(num_heads):                          # short static unroll
        lo = h * d_head
        hi = lo + d_head
        qh = q[:, lo:hi]
        kh = k[:, lo:hi]
        vh = v[:, lo:hi]

        # scores = (scale*q) . k^T  -- MXU, contraction on last dims (no .T)
        s = lax.dot_general(qh, kh, _CONTRACT_LAST_LAST,
                            preferred_element_type=jnp.float32)   # (L, S) f32

        # softmax along S; reciprocal of the (L,1) denom goes to the EUP
        m = jnp.max(s, axis=-1, keepdims=True)
        e = jnp.exp(s - m)
        denom = jnp.sum(e, axis=-1, keepdims=True)
        p = e * pl.reciprocal(denom, approx=True)
        attn_ref[0, h] = p

        # out slab stays lane-dense (L, d_model); per-head column slice store
        out_ref[0, :, lo:hi] = lax.dot_general(
            p.astype(jnp.bfloat16), vh, _CONTRACT_LAST_FIRST,
            preferred_element_type=jnp.float32)

        # Gaussian prior: reciprocals on (L,1) vectors, only multiplies touch
        # the (L, S) tile.
        s1 = sig[:, 2 * h:2 * h + 1]                    # (L, 1)
        s2 = sig[:, 2 * h + 1:2 * h + 2]                # (L, 1)
        amp = inv_2pi * pl.reciprocal(s1 * s2, approx=True)
        inv_2s1sq = pl.reciprocal(2.0 * s1 * s1, approx=True)
        inv_2s2sq = pl.reciprocal(2.0 * s2 * s2, approx=True)
        tgt_ref[0, h] = amp * jnp.exp(-dy * inv_2s1sq - dx * inv_2s2sq)


def attention2d_forward(params, query, key, value, *, num_heads, scale, seq_len):
    B, L, d_model = query.shape
    S = key.shape[1]
    d = d_model // num_heads
    width = int(math.sqrt(seq_len))
    assert L == seq_len and S == seq_len

    # Fold scale_factor into the query projection (free) and pre-cast the big
    # MXU weights to bf16 once.  Weights stay in nn.Linear (d_out, d_in) layout.
    wq = (params["w_q"] * scale).astype(jnp.bfloat16)
    bq = (params["b_q"] * scale).reshape(1, d_model)
    wk = params["w_k"].astype(jnp.bfloat16)
    bk = params["b_k"].reshape(1, d_model)
    wv = params["w_v"].astype(jnp.bfloat16)
    bv = params["b_v"].reshape(1, d_model)
    ws = params["w_sig"]
    bs = params["b_sig"].reshape(1, -1)

    q2d, sig2d = qsig_projection(query.reshape(B * L, d_model), wq, bq, ws, bs)
    k2d, v2d = kv_projection(key.reshape(B * S, d_model),
                             value.reshape(B * S, d_model), wk, bk, wv, bv)

    # Plain reshapes only -- no wrapper transposes / head-major relayout.
    q = q2d.reshape(B, L, d_model)
    k = k2d.reshape(B, S, d_model)
    v = v2d.reshape(B, S, d_model)
    sigma = sig2d.reshape(B, L, 2 * num_heads)

    kernel = functools.partial(_attn_kernel, num_heads=num_heads,
                               d_head=d, width=width)
    out, attn, target = pl.pallas_call(
        kernel,
        out_shape=(
            jax.ShapeDtypeStruct((B, L, d_model), jnp.float32),
            jax.ShapeDtypeStruct((B, num_heads, L, S), jnp.float32),
            jax.ShapeDtypeStruct((B, num_heads, L, S), jnp.float32),
        ),
        # All heads of one batch per step: amortizes per-step overhead, shares
        # sigma/distance math across heads; B >= 2 keeps both v7x TCs busy.
        grid=(B,),
        in_specs=[
            pl.BlockSpec((1, L, d_model), lambda b: (b, 0, 0)),
            pl.BlockSpec((1, S, d_model), lambda b: (b, 0, 0)),
            pl.BlockSpec((1, S, d_model), lambda b: (b, 0, 0)),
            pl.BlockSpec((1, L, 2 * num_heads), lambda b: (b, 0, 0)),
        ],
        out_specs=(
            pl.BlockSpec((1, L, d_model), lambda b: (b, 0, 0)),
            pl.BlockSpec((1, num_heads, L, S), lambda b: (b, 0, 0, 0)),
            pl.BlockSpec((1, num_heads, L, S), lambda b: (b, 0, 0, 0)),
        ),
        compiler_params=pltpu.CompilerParams(
            dimension_semantics=("parallel",)),
    )(q, k, v, sigma)

    # The original forward computes self.out_projection(out) and discards the
    # result -- no effect on outputs, so it is not computed here (w_o/b_o are
    # kept in the params only to mirror the module's parameters).
    # TODO(synk): for large L*S, tile the S axis (flash-style running softmax
    # for `out`, per-S-tile attn/target writeback) and set
    # pltpu.CompilerParams(vmem_limit_bytes=...) to fit v7x's 64 MiB VMEM.
    return out, attn, target


# ----------------------------------------------------------------------------
# Pure-JAX f32 reference (mirrors the PyTorch forward) for correctness checks.
# ----------------------------------------------------------------------------
def reference_forward(params, query, key, value, dx, dy, *, num_heads, scale):
    B, L, d_model = query.shape
    S = key.shape[1]
    d = d_model // num_heads

    def lin(x, w, b):
        return x @ w.T + b

    sigma = lin(query, params["w_sig"], params["b_sig"]).reshape(B, L, num_heads, 2)
    q = lin(query, params["w_q"], params["b_q"]).reshape(B, L, num_heads, d)
    k = lin(key, params["w_k"], params["b_k"]).reshape(B, S, num_heads, d)
    v = lin(value, params["w_v"], params["b_v"]).reshape(B, S, num_heads, d)

    scores = jnp.einsum('blhe,bshe->bhls', q, k) * scale
    p = jax.nn.softmax(scores, axis=-1)
    out = jnp.einsum('bhls,bshd->blhd', p, v).reshape(B, L, d_model)

    sig = sigma.transpose(0, 2, 1, 3)                    # (B, H, L, 2)
    sig = jax.nn.sigmoid(sig * 5.0) + 1e-05
    sig = jnp.power(3.0, sig) - 1.0
    s1 = sig[..., 0:1]
    s2 = sig[..., 1:2]
    target = (1.0 / (2.0 * math.pi * s1 * s2)) * jnp.exp(
        -dy / (2.0 * s1 ** 2) - dx / (2.0 * s2 ** 2))
    return out, p, target


# ----------------------------------------------------------------------------
# Setup helpers
# ----------------------------------------------------------------------------
def make_params(key, d_model, num_heads):
    ks = jax.random.split(key, 10)
    bound = 1.0 / math.sqrt(d_model)

    def u(k, shape):
        return jax.random.uniform(k, shape, jnp.float32, -bound, bound)

    return {
        "w_q": u(ks[0], (d_model, d_model)), "b_q": u(ks[1], (d_model,)),
        "w_k": u(ks[2], (d_model, d_model)), "b_k": u(ks[3], (d_model,)),
        "w_v": u(ks[4], (d_model, d_model)), "b_v": u(ks[5], (d_model,)),
        "w_sig": u(ks[6], (2 * num_heads, d_model)), "b_sig": u(ks[7], (2 * num_heads,)),
        # out_projection params exist in the module but its output is discarded.
        "w_o": u(ks[8], (d_model, d_model)), "b_o": u(ks[9], (d_model,)),
    }


def make_distance_maps(seq_len):
    width = int(math.sqrt(seq_len))
    points = list(itertools.product(range(width), range(width)))
    dx = np.zeros((seq_len, seq_len), dtype=np.float32)
    dy = np.zeros((seq_len, seq_len), dtype=np.float32)
    for i, p1 in enumerate(points):
        for j, p2 in enumerate(points):
            dy[i, j] = float((p1[0] - p2[0]) ** 2)
            dx[i, j] = float((p1[1] - p2[1]) ** 2)
    return jnp.asarray(dx), jnp.asarray(dy)


if __name__ == "__main__":
    # Small shapes: seq_len must be a perfect square.
    B, seq_len, d_model, num_heads = 2, 16, 32, 4
    L = S = seq_len
    d = d_model // num_heads
    scale = 1.0 / math.sqrt(d)      # scale_factor's deterministic init

    root = jax.random.PRNGKey(0)
    kq, kk, kv, kp = jax.random.split(root, 4)
    query = jax.random.normal(kq, (B, L, d_model), jnp.float32)
    key_ = jax.random.normal(kk, (B, S, d_model), jnp.float32)
    value = jax.random.normal(kv, (B, S, d_model), jnp.float32)
    params = make_params(kp, d_model, num_heads)
    dx, dy = make_distance_maps(seq_len)     # used by the reference only

    out, attn, target = attention2d_forward(
        params, query, key_, value,
        num_heads=num_heads, scale=scale, seq_len=seq_len)
    jax.block_until_ready((out, attn, target))

    out_ref, attn_ref, target_ref = reference_forward(
        params, query, key_, value, dx, dy, num_heads=num_heads, scale=scale)

    # bf16 MXU inputs + approx reciprocals give ~1e-3-level deviations vs the
    # f32 reference; 1e-2 leaves comfortable margin.
    assert jnp.allclose(out, out_ref, atol=1e-2, rtol=1e-2)
    assert jnp.allclose(attn, attn_ref, atol=1e-2, rtol=1e-2)
    assert jnp.allclose(target, target_ref, atol=1e-2, rtol=1e-2)

    print("KERNEL_OK")
</pallas_src>

<mosaic_0001>
module attributes {stable_mosaic.version = 11 : i64} {
  func.func @_qsig_proj_kernel(%arg0: i32, %arg1: memref<32x32xf32, #tpu.memory_space<vmem>>, %arg2: memref<32x32xbf16, #tpu.memory_space<vmem>>, %arg3: memref<1x32xf32, #tpu.memory_space<vmem>>, %arg4: memref<8x32xf32, #tpu.memory_space<vmem>>, %arg5: memref<1x8xf32, #tpu.memory_space<vmem>>, %arg6: memref<32x32xbf16, #tpu.memory_space<vmem>>, %arg7: memref<32x8xf32, #tpu.memory_space<vmem>>) attributes {dimension_semantics = [#tpu.dimension_semantics<parallel>], iteration_bounds = array<i64: 1>, scalar_prefetch = 0 : i64, scratch_operands = 0 : i64, tpu.core_type = #tpu.core_type<tc>, window_params = [{transform_indices = @transform_0, window_bounds = array<i64: 32, 32>}, {pipeline_mode = #tpu.pipeline_mode<synchronous>, transform_indices = @transform_1, window_bounds = array<i64: 32, 32>}, {pipeline_mode = #tpu.pipeline_mode<synchronous>, transform_indices = @transform_2, window_bounds = array<i64: 1, 32>}, {pipeline_mode = #tpu.pipeline_mode<synchronous>, transform_indices = @transform_3, window_bounds = array<i64: 8, 32>}, {pipeline_mode = #tpu.pipeline_mode<synchronous>, transform_indices = @transform_4, window_bounds = array<i64: 1, 8>}, {transform_indices = @transform_5, window_bounds = array<i64: 32, 32>}, {transform_indices = @transform_6, window_bounds = array<i64: 32, 8>}]} {
    %c0 = arith.constant 0 : index
    %c0_0 = arith.constant 0 : index
    %0 = vector.load %arg1[%c0, %c0_0] : memref<32x32xf32, #tpu.memory_space<vmem>>, vector<32x32xf32>
    %1 = arith.truncf %0 : vector<32x32xf32> to vector<32x32xbf16>
    %c0_1 = arith.constant 0 : index
    %c0_2 = arith.constant 0 : index
    %2 = vector.load %arg2[%c0_1, %c0_2] : memref<32x32xbf16, #tpu.memory_space<vmem>>, vector<32x32xbf16>
    %cst = arith.constant dense<0.000000e+00> : vector<32x32xf32>
    %3 = tpu.matmul %1, %2, %cst {dimension_numbers = #tpu.dot_dimension_numbers<[1], [1], [0], [0], [0, 0, 1, 0], [], []>} : vector<32x32xbf16>, vector<32x32xbf16>, vector<32x32xf32> -> vector<32x32xf32>
    %c0_3 = arith.constant 0 : index
    %c0_4 = arith.constant 0 : index
    %4 = vector.load %arg3[%c0_3, %c0_4] : memref<1x32xf32, #tpu.memory_space<vmem>>, vector<1x32xf32>
    %5 = vector.broadcast %4 : vector<1x32xf32> to vector<32x32xf32>
    %6 = arith.addf %3, %5 : vector<32x32xf32>
    %7 = arith.truncf %6 : vector<32x32xf32> to vector<32x32xbf16>
    %c0_5 = arith.constant 0 : index
    %c0_6 = arith.constant 0 : index
    %8 = vector.load %arg6[%c0_5, %c0_6] : memref<32x32xbf16, #tpu.memory_space<vmem>>, vector<32x32xbf16>
    tpu.vector_store %arg6[%c0_5, %c0_6], %7 {strides = array<i32>} : memref<32x32xbf16, #tpu.memory_space<vmem>>, vector<32x32xbf16>,
    %c0_7 = arith.constant 0 : index
    %c0_8 = arith.constant 0 : index
    %9 = vector.load %arg4[%c0_7, %c0_8] : memref<8x32xf32, #tpu.memory_space<vmem>>, vector<8x32xf32>
    %cst_9 = arith.constant dense<0.000000e+00> : vector<32x8xf32>
    %10 = tpu.matmul %0, %9, %cst_9 {dimension_numbers = #tpu.dot_dimension_numbers<[1], [1], [0], [0], [0, 0, 1, 0], [], []>} : vector<32x32xf32>, vector<8x32xf32>, vector<32x8xf32> -> vector<32x8xf32>
    %c0_10 = arith.constant 0 : index
    %c0_11 = arith.constant 0 : index
    %11 = vector.load %arg5[%c0_10, %c0_11] : memref<1x8xf32, #tpu.memory_space<vmem>>, vector<1x8xf32>
    %12 = vector.broadcast %11 : vector<1x8xf32> to vector<32x8xf32>
    %13 = arith.addf %10, %12 : vector<32x8xf32>
    %c0_12 = arith.constant 0 : index
    %c0_13 = arith.constant 0 : index
    %14 = vector.load %arg7[%c0_12, %c0_13] : memref<32x8xf32, #tpu.memory_space<vmem>>, vector<32x8xf32>
    tpu.vector_store %arg7[%c0_12, %c0_13], %13 {strides = array<i32>} : memref<32x8xf32, #tpu.memory_space<vmem>>, vector<32x8xf32>,
    return
  }
  func.func @transform_0(%arg0: i32) -> (i32, i32) {
    %c0_i32 = arith.constant 0 : i32
    %c0_i32_0 = arith.constant 0 : i32
    return %arg0, %c0_i32 : i32, i32
  }
  func.func @transform_1(%arg0: i32) -> (i32, i32) {
    %c0_i32 = arith.constant 0 : i32
    %c0_i32_0 = arith.constant 0 : i32
    %c0_i32_1 = arith.constant 0 : i32
    return %c0_i32, %c0_i32_0 : i32, i32
  }
  func.func @transform_2(%arg0: i32) -> (i32, i32) {
    %c0_i32 = arith.constant 0 : i32
    %c0_i32_0 = arith.constant 0 : i32
    %c0_i32_1 = arith.constant 0 : i32
    return %c0_i32, %c0_i32_0 : i32, i32
  }
  func.func @transform_3(%arg0: i32) -> (i32, i32) {
    %c0_i32 = arith.constant 0 : i32
    %c0_i32_0 = arith.constant 0 : i32
    %c0_i32_1 = arith.constant 0 : i32
    return %c0_i32, %c0_i32_0 : i32, i32
  }
  func.func @transform_4(%arg0: i32) -> (i32, i32) {
    %c0_i32 = arith.constant 0 : i32
    %c0_i32_0 = arith.constant 0 : i32
    %c0_i32_1 = arith.constant 0 : i32
    return %c0_i32, %c0_i32_0 : i32, i32
  }
  func.func @transform_5(%arg0: i32) -> (i32, i32) {
    %c0_i32 = arith.constant 0 : i32
    %c0_i32_0 = arith.constant 0 : i32
    return %arg0, %c0_i32 : i32, i32
  }
  func.func @transform_6(%arg0: i32) -> (i32, i32) {
    %c0_i32 = arith.constant 0 : i32
    %c0_i32_0 = arith.constant 0 : i32
    return %arg0, %c0_i32 : i32, i32
  }
}

</mosaic_0001>

<bundles_post_ra>
// kernel: tpu_custom_call.1
= control target key start
LH: loop header
LB: loop body
LE: loop exit
PB: predicated region body
PF: predicated region fallthrough
CT: control target
= control target key end

     0   :  { %12 = vsyncpa [#allocation3], 0  ;;  %s545_s0 = inlined_call_operand.hbm [shape: f32[32,32], index: 0, kind: input, shape index: {}]   ;;  %s546_s1 = inlined_call_operand.hbm [shape: bf16[32,32], index: 1, kind: input, shape index: {}]   ;;  %s547_s2 = inlined_call_operand.vmem [shape: f32[1,32], index: 2, kind: input, shape index: {}]   ;;  %s548_s3 = inlined_call_operand.hbm [shape: f32[8,32], index: 3, kind: input, shape index: {}]   ;;  %s549_s4 = inlined_call_operand.vmem [shape: f32[1,8], index: 4, kind: input, shape index: {}]   ;;  %s550_s5 = inlined_call_operand.hbm [shape: bf16[32,32], index: 5, kind: output, shape index: {0}]   ;;  %s551_s6 = inlined_call_operand.vmem [shape: f32[32,8], index: 6, kind: output, shape index: {1}]  }
   0x1   :  { %13 = vsyncpa [#allocation6], 0 }
   0x2   :  { %14 = vsyncpa [#allocation4], 0  ;;  %s450_s21 = smov [#allocation5]  }
   0x3   :  { %s32_s22 = sshll.u32 %s450_s21, 4  ;;  %s33_s22 = int_to_ptr.vmem [resolvable:$true] %s32_s22 }
   0x4   :  { %s372_s23 = scalar_lea.vmem %s33_s22, 256  ;;  %p377_p1 = scmp.lt.s32.totalorder %s33_s22, %s33_s22 }
   0x5   :  { %p373_p0 = scmp.ne.s32.totalorder %s33_s22, %s372_s23  ;;  %p378_p2 = scmp.lt.s32.totalorder %s372_s23, %s372_s23 }
   0x7   :  { %p379_p3 = por %p378_p2, %p377_p1 }
   0x9   :  { %p380_p4 = pnand %p379_p3, %p373_p0 }
   0xb   :  { %383 = shalt.err (!%p380_p4)
}
   0xc   :  { %s451_s24 = smov 64   ;;  %s452_s25 = smov 4  }
   0xd   :  { %38 = dma.hbm_to_vmem [thread:$0]  %s546_s1, 256, %s33_s22, [#allocation6], %s451_s24, %s451_s24, %s452_s25  }
   0xe   :  { %s453_s28 = smov [#allocation2]  }
   0xf   :  { %s20_s29 = sshll.u32 %s453_s28, 4  ;;  %s21_s29 = int_to_ptr.vmem [resolvable:$true] %s20_s29 }
  0x10   :  { %s392_s30 = scalar_lea.vmem %s21_s29, 512  ;;  %p397_p6 = scmp.lt.s32.totalorder %s21_s29, %s21_s29 }
  0x11   :  { %p393_p5 = scmp.ne.s32.totalorder %s21_s29, %s392_s30  ;;  %p398_p7 = scmp.lt.s32.totalorder %s392_s30, %s392_s30 }
  0x13   :  { %p399_p8 = por %p398_p7, %p397_p6 }
  0x15   :  { %p400_p9 = pnand %p399_p8, %p393_p5 }
  0x17   :  { %403 = shalt.err (!%p400_p9)
}
  0x18   :  { %s454_s7 = smov 128   ;;  %s455_s8 = smov 8  }
  0x19   :  { %26 = dma.hbm_to_vmem [thread:$0]  %s545_s0, 512, %s21_s29, [#allocation3], %s454_s7, %s454_s7, %s455_s8  }
  0x1a   :  { %s456_s11 = smov [#allocation7]  }
  0x1b   :  { %s47_s12 = sshll.u32 %s456_s11, 4  ;;  %s48_s12 = int_to_ptr.vmem [resolvable:$true] %s47_s12 }
  0x1c   :  { %s412_s1 = scalar_lea.vmem %s48_s12, 128  ;;  %p417_p11 = scmp.lt.s32.totalorder %s48_s12, %s48_s12 }
  0x1d   :  { %p413_p10 = scmp.ne.s32.totalorder %s48_s12, %s412_s1  ;;  %p418_p12 = scmp.lt.s32.totalorder %s412_s1, %s412_s1 }
  0x1f   :  { %p419_p13 = por %p418_p12, %p417_p11 }
  0x21   :  { %p420_p0 = pnand %p419_p13, %p413_p10 }
  0x23   :  { %423 = shalt.err (!%p420_p0)
}
  0x24   :  { %50 = dma.hbm_to_vmem [thread:$0]  %s548_s3, 128, %s48_s12, [#allocation6]  }
  0x25   :  { %444 = dma.done.wait [#allocation3], 512  }
  0x26   :  { %445 = vsyncadd [#allocation3], 4294966784 }
  0x27   :  { %446 = dma.done.wait [#allocation6], 384  }
  0x28   :  { %447 = vsyncadd [#allocation6], 4294966912  ;;  %vm90_vm0 = vcmask 261120   ;;  %v362_v0 = vld [vmem:[#allocation5 + $0x8] sm:$0xff]   ;;  %v363_v1 = vld [vmem:[#allocation5] sm:$0xff]   ;;  %vm281_vm1 = vcmask 64512  }
  0x29   :  { %352 = vmatprep.subr.msk.bf16.mxu0 %vm90_vm0, %v362_v0  ;;  %v101_v2 = vsel %vm90_vm0, %v362_v0, 0  ;;  %v173_v3 = vld [vmem:[#allocation7] sm:$0xff]  ;;  %v63_v4 = vld [vmem:[#allocation2] sm:$0xff]  ;;  %v64_v5 = vld [vmem:[#allocation2 + $0x8] sm:$0xff]  ;;  %v98_v8 = vsel %vm90_vm0, %v363_v1, 0  ;;  %vm168_vm2 = vcmask 257024  }
  0x2a   :  { %337 = vmatpush3.bf16.xpose.msra.mxu0 %v101_v2  ;;  %344 = vmatprep.subr.msk.mxu1 %vm90_vm0, %v173_v3  ;;  %v67_v6 = vpack.c.bf16 %v64_v5, %v63_v4  ;;  %v65_v7 = vld [vmem:[#allocation2 + $0x10] sm:$0xff]  ;;  %v66_v9 = vld [vmem:[#allocation2 + $0x18] sm:$0xff]  ;;  %v317_v11 = vld [vmem:[%s549_s4] ss:$0 sm:$0xff]  ;;  %s457_s26 = smov [#allocation8]  }
  0x2b   :  { %353 = vmatprep.subr.msk.bf16.mxu0 %vm90_vm0, %v363_v1  ;;  %345 = vmatpush3.xpose.msk.msra.mxu1 %vm90_vm0, %v173_v3  ;;  %v68_v10 = vpack.c.bf16 %v66_v9, %v65_v7  ;;  %v308_v20 = vld [vmem:[%s547_s2] ss:$0 sm:$0xff]  ;;  %s291_s27 = sshll.u32 %s457_s26, 4  ;;  %s292_s27 = int_to_ptr.vmem [resolvable:$true] %s291_s27 }
  0x2c   :  { %340 = vmatprep.mubr.msk.bf16.mxu0 %vm90_vm0, %v67_v6  ;;  %346 = vmatprep.mubr.msk.f32.mxu1 %vm90_vm0, %v63_v4  ;;  %s424_s2 = scalar_lea.vmem %s292_s27, 256  ;;  %p429_p2 = scmp.lt.s32.totalorder %s292_s27, %s292_s27 }
  0x2d   :  { %p425_p1 = scmp.ne.s32.totalorder %s292_s27, %s424_s2  ;;  %p430_p3 = scmp.lt.s32.totalorder %s424_s2, %s424_s2 }
  0x2e   :  { %347 = vmatmul.mubr.msk.f32.vlgmr.msra.gmra.mxu1 %vm90_vm0, %v64_v5 }
  0x2f   :  { %349 = vmatprep.mubr.msk.f32.mxu1 %vm90_vm0, %v65_v7  ;;  %p431_p4 = por %p430_p3, %p429_p2 }
  0x31   :  { %p432_p5 = pnand %p431_p4, %p425_p1 }
  0x32   :  { %339 = vmatpush3.bf16.xpose.msra.mxu0 %v98_v8  ;;  %350 = vmatmul.mubr.msk.f32.gmra.mxu1 %vm90_vm0, %v66_v9 }
  0x39   :  { %341 = vmatmul.mubr.msk.bf16.vlgmr.msra.gmra.mxu0 %vm90_vm0, %v68_v10 }
  0xee   :  { %v348_v12 = vpop.f32.mrf.mxu1 }
  0xef   :  { %v268_v13 = vadd.f32 %v348_v12, %v317_v11 }
  0xf0   :  { %v262_v14 = vpop.f32.mrf.mxu1 }
  0xf1   :  { %283 = vst.msk [vmem:[%s551_s6 + $0x8] sm:$0xff] %vm281_vm1, %v268_v13  ;;  %v263_v15 = vadd.f32 %v317_v11, %v262_v14 }
  0xf2   :  { %v351_v16 = vpop.f32.mrf.mxu1 }
  0xf3   :  { %282 = vst.msk [vmem:[%s551_s6] sm:$0xff] %vm281_vm1, %v263_v15  ;;  %v278_v17 = vadd.f32 %v351_v16, %v317_v11 }
  0xf4   :  { %v272_v18 = vpop.f32.mrf.mxu1 }
  0xf5   :  { %285 = vst.msk [vmem:[%s551_s6 + $0x18] sm:$0xff] %vm281_vm1, %v278_v17  ;;  %v273_v19 = vadd.f32 %v317_v11, %v272_v18 }
  0xf7   :  { %284 = vst.msk [vmem:[%s551_s6 + $0x10] sm:$0xff] %vm281_vm1, %v273_v19 }
  0xf9   :  { %v342_v21 = vpop.f32.mrf.mxu0 }
  0xfa   :  { %v146_v22 = vadd.f32 %v342_v21, %v308_v20 }
  0xfb   :  { %v137_v23 = vpop.f32.mrf.mxu0 }
  0xfc   :  { %v325_v24 = vpack.c.bf16 %v146_v22, %v146_v22  ;;  %v138_v25 = vadd.f32 %v308_v20, %v137_v23 }
  0xfd   :  { %v343_v26 = vpop.f32.mrf.mxu0 }
  0xfe   :  { %171 = vst.msk [vmem:[#allocation8 + $0x8] sm:$0xf] %vm168_vm2, %v325_v24  ;;  %v323_v27 = vpack.c.bf16 %v138_v25, %v138_v25  ;;  %v149_v28 = vadd.f32 %v343_v26, %v308_v20 }
  0xff   :  { %v140_v29 = vpop.f32.mrf.mxu0 }
 0x100   :  { %169 = vst.msk [vmem:[#allocation8] sm:$0xf] %vm168_vm2, %v323_v27  ;;  %v326_v30 = vpack.c.bf16 %v149_v28, %v149_v28  ;;  %v141_v31 = vadd.f32 %v308_v20, %v140_v29 }
 0x102   :  { %172 = vst.msk [vmem:[#allocation8 + $0xc] sm:$0xf] %vm168_vm2, %v326_v30  ;;  %v324_v32 = vpack.c.bf16 %v141_v31, %v141_v31 }
 0x104   :  { %170 = vst.msk [vmem:[#allocation8 + $0x4] sm:$0xf] %vm168_vm2, %v324_v32 }
 0x105   :  { %435 = shalt.err (!%p432_p5)
}
 0x106   :  { %297 = dma.vmem_to_hbm [thread:$0]  %s292_s27, 256, %s550_s5, [#allocation4], %s451_s24, %s451_s24, %s452_s25  }
 0x107   :  { %448 = dma.done.wait [#allocation4], 256  }
 0x108   :  { %449 = vsyncadd [#allocation4], 4294967040 }
 0x109   :  { %305 = vsyncpa [#allocation3], 1 }
 0x10a   :  { %306 = vsyncpa [#allocation6], 1 }
 0x10b   :  { %307 = vsyncpa [#allocation4], 1 }

</bundles_post_ra>
